<compile_context>
chip_gen: v5e
topology: v5e:2x2
jax: 0.10.0
libtpu: 0.0.40
codegen_flags: <defaults>
</compile_context>

<pallas_src>
import jax
import jax.numpy as jnp
from jax.experimental import pallas as pl
from jax.experimental.pallas import tpu as pltpu


def _round_up(n, m):
    return ((n + m - 1) // m) * m


def vae_encode_kernel(x_ref, w1_ref, b1_ref, w2_ref, b2_ref, eps_ref, out_ref):
    D = eps_ref.shape[-1]

    # h1 = ReLU(x @ W1 + b1)
    h1 = jnp.dot(x_ref[...], w1_ref[...], preferred_element_type=jnp.float32)
    h1 = jnp.maximum(h1 + b1_ref[...], 0.0)

    # Fused projection: [mu | log_var] = h1 @ [Wmu | Wlv] + [bmu | blv]
    mulv = jnp.dot(h1, w2_ref[...], preferred_element_type=jnp.float32) + b2_ref[...]
    mu = mulv[:, :D]
    lv = mulv[:, D:]

    # Reparameterize: z = eps * exp(0.5 * log_var) + mu
    z = eps_ref[...] * jnp.exp(0.5 * lv) + mu

    # Single lane-dense store: [ z | mu | log_var | zero-pad to 128 lanes ]
    pieces = [z, mu, lv]
    pad = out_ref.shape[-1] - 3 * D
    if pad > 0:
        pieces.append(jnp.zeros((z.shape[0], pad), jnp.float32))
    out_ref[...] = jnp.concatenate(pieces, axis=-1).astype(out_ref.dtype)


def vae_encode(x, w1, b1, wmu, bmu, wlv, blv, eps, *, max_block_b=256):
    B, C = x.shape
    L = w1.shape[1]
    D = wmu.shape[1]

    # Fuse the two latent projections (shared h1, same K reduction).
    w2 = jnp.concatenate([wmu, wlv], axis=1)    # [L, 2D]
    b2 = jnp.concatenate([bmu, blv], axis=1)    # [1, 2D]

    dpad = _round_up(3 * D, 128)                # lane-dense output slab width

    # Batch tile: whole batch if small, else a (multiple-of-8) tile.
    tb = B if B <= max_block_b else max_block_b
    grid = (pl.cdiv(B, tb),)

    out = pl.pallas_call(
        vae_encode_kernel,
        out_shape=jax.ShapeDtypeStruct((B, dpad), jnp.float32),
        grid=grid,
        in_specs=[
            pl.BlockSpec((tb, C), lambda i: (i, 0)),      # x         (batch-tiled)
            pl.BlockSpec((C, L), lambda i: (0, 0)),       # W1        (resident)
            pl.BlockSpec((1, L), lambda i: (0, 0)),       # b1        (resident)
            pl.BlockSpec((L, 2 * D), lambda i: (0, 0)),   # [Wmu|Wlv] (resident)
            pl.BlockSpec((1, 2 * D), lambda i: (0, 0)),   # [bmu|blv] (resident)
            pl.BlockSpec((tb, D), lambda i: (i, 0)),      # eps       (batch-tiled)
        ],
        out_specs=pl.BlockSpec((tb, dpad), lambda i: (i, 0)),
        compiler_params=pltpu.CompilerParams(
            dimension_semantics=("parallel",)),           # megacore on v7x
    )(x, w1, b1, w2, b2, eps)

    z = out[:, :D]
    mu = out[:, D:2 * D]
    log_var = out[:, 2 * D:3 * D]
    return z, mu, log_var


def reference(x, w1, b1, wmu, bmu, wlv, blv, eps):
    h1 = jnp.maximum(x @ w1 + b1, 0.0)
    mu = h1 @ wmu + bmu
    lv = h1 @ wlv + blv
    z = eps * jnp.exp(0.5 * lv) + mu
    return z, mu, lv


if __name__ == "__main__":
    # Small shapes consistent with the module.
    batch = 8
    composition_len = 32
    layer_1d = 64
    latent_dimension = 16

    key = jax.random.PRNGKey(0)
    kx, kw1, kb1, kwm, kbm, kwl, kbl, keps = jax.random.split(key, 8)

    x = jax.random.normal(kx, (batch, composition_len), jnp.float32)

    # PyTorch nn.Linear parameters, stored transposed as [in, out].
    w1 = jax.random.normal(kw1, (composition_len, layer_1d), jnp.float32) * 0.1
    b1 = jax.random.normal(kb1, (1, layer_1d), jnp.float32) * 0.1
    wmu = jax.random.normal(kwm, (layer_1d, latent_dimension), jnp.float32) * 0.1
    bmu = jax.random.normal(kbm, (1, latent_dimension), jnp.float32) * 0.1
    wlv = jax.random.normal(kwl, (layer_1d, latent_dimension), jnp.float32) * 0.1
    blv = jax.random.normal(kbl, (1, latent_dimension), jnp.float32) * 0.1

    # eps ~ N(0,1) drawn outside the kernel (matches torch.randn_like up to
    # the RNG stream).
    eps = jax.random.normal(keps, (batch, latent_dimension), jnp.float32)

    z, mu, log_var = vae_encode(x, w1, b1, wmu, bmu, wlv, blv, eps)
    jax.block_until_ready((z, mu, log_var))

    z_ref, mu_ref, lv_ref = reference(x, w1, b1, wmu, bmu, wlv, blv, eps)
    assert jnp.allclose(mu, mu_ref, atol=1e-5, rtol=1e-5)
    assert jnp.allclose(log_var, lv_ref, atol=1e-5, rtol=1e-5)
    assert jnp.allclose(z, z_ref, atol=1e-5, rtol=1e-5)

    print("KERNEL_OK")
</pallas_src>

<mosaic_0001>
module attributes {stable_mosaic.version = 11 : i64} {
  func.func @vae_encode_kernel(%arg0: i32, %arg1: memref<8x32xf32, #tpu.memory_space<vmem>>, %arg2: memref<32x64xf32, #tpu.memory_space<vmem>>, %arg3: memref<1x64xf32, #tpu.memory_space<vmem>>, %arg4: memref<64x32xf32, #tpu.memory_space<vmem>>, %arg5: memref<1x32xf32, #tpu.memory_space<vmem>>, %arg6: memref<8x16xf32, #tpu.memory_space<vmem>>, %arg7: memref<8x128xf32, #tpu.memory_space<vmem>>) attributes {dimension_semantics = [#tpu.dimension_semantics<parallel>], iteration_bounds = array<i64: 1>, scalar_prefetch = 0 : i64, scratch_operands = 0 : i64, tpu.core_type = #tpu.core_type<tc>, window_params = [{transform_indices = @transform_0, window_bounds = array<i64: 8, 32>}, {pipeline_mode = #tpu.pipeline_mode<synchronous>, transform_indices = @transform_1, window_bounds = array<i64: 32, 64>}, {pipeline_mode = #tpu.pipeline_mode<synchronous>, transform_indices = @transform_2, window_bounds = array<i64: 1, 64>}, {pipeline_mode = #tpu.pipeline_mode<synchronous>, transform_indices = @transform_3, window_bounds = array<i64: 64, 32>}, {pipeline_mode = #tpu.pipeline_mode<synchronous>, transform_indices = @transform_4, window_bounds = array<i64: 1, 32>}, {transform_indices = @transform_5, window_bounds = array<i64: 8, 16>}, {transform_indices = @transform_6, window_bounds = array<i64: 8, 128>}]} {
    %c0 = arith.constant 0 : index
    %c0_0 = arith.constant 0 : index
    %0 = vector.load %arg1[%c0, %c0_0] : memref<8x32xf32, #tpu.memory_space<vmem>>, vector<8x32xf32>
    %c0_1 = arith.constant 0 : index
    %c0_2 = arith.constant 0 : index
    %1 = vector.load %arg2[%c0_1, %c0_2] : memref<32x64xf32, #tpu.memory_space<vmem>>, vector<32x64xf32>
    %cst = arith.constant dense<0.000000e+00> : vector<8x64xf32>
    %2 = tpu.matmul %0, %1, %cst {dimension_numbers = #tpu.dot_dimension_numbers<[1], [0], [0], [1], [0, 0, 1, 1], [], []>} : vector<8x32xf32>, vector<32x64xf32>, vector<8x64xf32> -> vector<8x64xf32>
    %c0_3 = arith.constant 0 : index
    %c0_4 = arith.constant 0 : index
    %3 = vector.load %arg3[%c0_3, %c0_4] : memref<1x64xf32, #tpu.memory_space<vmem>>, vector<1x64xf32>
    %4 = vector.broadcast %3 : vector<1x64xf32> to vector<8x64xf32>
    %5 = arith.addf %2, %4 : vector<8x64xf32>
    %cst_5 = arith.constant 0.000000e+00 : f32
    %6 = vector.broadcast %cst_5 : f32 to vector<8x64xf32>
    %7 = arith.maximumf %5, %6 : vector<8x64xf32>
    %c0_6 = arith.constant 0 : index
    %c0_7 = arith.constant 0 : index
    %8 = vector.load %arg4[%c0_6, %c0_7] : memref<64x32xf32, #tpu.memory_space<vmem>>, vector<64x32xf32>
    %cst_8 = arith.constant dense<0.000000e+00> : vector<8x32xf32>
    %9 = tpu.matmul %7, %8, %cst_8 {dimension_numbers = #tpu.dot_dimension_numbers<[1], [0], [0], [1], [0, 0, 1, 1], [], []>} : vector<8x64xf32>, vector<64x32xf32>, vector<8x32xf32> -> vector<8x32xf32>
    %c0_9 = arith.constant 0 : index
    %c0_10 = arith.constant 0 : index
    %10 = vector.load %arg5[%c0_9, %c0_10] : memref<1x32xf32, #tpu.memory_space<vmem>>, vector<1x32xf32>
    %11 = vector.broadcast %10 : vector<1x32xf32> to vector<8x32xf32>
    %12 = arith.addf %9, %11 : vector<8x32xf32>
    %13 = vector.extract_strided_slice %12 {offsets = [0, 0], sizes = [8, 16], strides = [1, 1]} : vector<8x32xf32> to vector<8x16xf32>
    %14 = vector.extract_strided_slice %12 {offsets = [0, 16], sizes = [8, 16], strides = [1, 1]} : vector<8x32xf32> to vector<8x16xf32>
    %c0_11 = arith.constant 0 : index
    %c0_12 = arith.constant 0 : index
    %15 = vector.load %arg6[%c0_11, %c0_12] : memref<8x16xf32, #tpu.memory_space<vmem>>, vector<8x16xf32>
    %cst_13 = arith.constant 5.000000e-01 : f32
    %16 = vector.broadcast %cst_13 : f32 to vector<8x16xf32>
    %17 = arith.mulf %16, %14 : vector<8x16xf32>
    %18 = math.exp %17 : vector<8x16xf32>
    %19 = arith.mulf %15, %18 : vector<8x16xf32>
    %20 = arith.addf %19, %13 : vector<8x16xf32>
    %cst_14 = arith.constant 0.000000e+00 : f32
    %21 = vector.broadcast %cst_14 : f32 to vector<8x80xf32>
    %22 = tpu.concatenate %20, %13, %14, %21 in 1 : vector<8x16xf32>, vector<8x16xf32>, vector<8x16xf32>, vector<8x80xf32> -> vector<8x128xf32>
    %c0_15 = arith.constant 0 : index
    %c0_16 = arith.constant 0 : index
    %23 = vector.load %arg7[%c0_15, %c0_16] : memref<8x128xf32, #tpu.memory_space<vmem>>, vector<8x128xf32>
    tpu.vector_store %arg7[%c0_15, %c0_16], %22 {strides = array<i32>} : memref<8x128xf32, #tpu.memory_space<vmem>>, vector<8x128xf32>,
    return
  }
  func.func @transform_0(%arg0: i32) -> (i32, i32) {
    %c0_i32 = arith.constant 0 : i32
    %c0_i32_0 = arith.constant 0 : i32
    return %arg0, %c0_i32 : i32, i32
  }
  func.func @transform_1(%arg0: i32) -> (i32, i32) {
    %c0_i32 = arith.constant 0 : i32
    %c0_i32_0 = arith.constant 0 : i32
    %c0_i32_1 = arith.constant 0 : i32
    return %c0_i32, %c0_i32_0 : i32, i32
  }
  func.func @transform_2(%arg0: i32) -> (i32, i32) {
    %c0_i32 = arith.constant 0 : i32
    %c0_i32_0 = arith.constant 0 : i32
    %c0_i32_1 = arith.constant 0 : i32
    return %c0_i32, %c0_i32_0 : i32, i32
  }
  func.func @transform_3(%arg0: i32) -> (i32, i32) {
    %c0_i32 = arith.constant 0 : i32
    %c0_i32_0 = arith.constant 0 : i32
    %c0_i32_1 = arith.constant 0 : i32
    return %c0_i32, %c0_i32_0 : i32, i32
  }
  func.func @transform_4(%arg0: i32) -> (i32, i32) {
    %c0_i32 = arith.constant 0 : i32
    %c0_i32_0 = arith.constant 0 : i32
    %c0_i32_1 = arith.constant 0 : i32
    return %c0_i32, %c0_i32_0 : i32, i32
  }
  func.func @transform_5(%arg0: i32) -> (i32, i32) {
    %c0_i32 = arith.constant 0 : i32
    %c0_i32_0 = arith.constant 0 : i32
    return %arg0, %c0_i32 : i32, i32
  }
  func.func @transform_6(%arg0: i32) -> (i32, i32) {
    %c0_i32 = arith.constant 0 : i32
    %c0_i32_0 = arith.constant 0 : i32
    return %arg0, %c0_i32 : i32, i32
  }
}

</mosaic_0001>

<bundles_post_ra>
// kernel: tpu_custom_call.1
= control target key start
LH: loop header
LB: loop body
LE: loop exit
PB: predicated region body
PF: predicated region fallthrough
CT: control target
= control target key end

     0   :  { %s256_s0 = inlined_call_operand.vmem [shape: f32[8,32], index: 0, kind: input, shape index: {}]   ;;  %s257_s1 = inlined_call_operand.vmem [shape: f32[32,64], index: 1, kind: input, shape index: {}]   ;;  %s258_s2 = inlined_call_operand.vmem [shape: f32[1,64], index: 2, kind: input, shape index: {}]   ;;  %s259_s3 = inlined_call_operand.vmem [shape: f32[64,32], index: 3, kind: input, shape index: {}]   ;;  %s260_s4 = inlined_call_operand.vmem [shape: f32[1,32], index: 4, kind: input, shape index: {}]   ;;  %s261_s5 = inlined_call_operand.vmem [shape: f32[8,16], index: 5, kind: input, shape index: {}]   ;;  %s262_s6 = inlined_call_operand.hbm [shape: f32[8,128], index: 6, kind: output, shape index: {}]  }
   0x1   :  { %v28_v0 = vld [vmem:[%s257_s1 + $0x18] sm:$0xff]  ;;  %v27_v1 = vld [vmem:[%s257_s1 + $0x10] sm:$0xff]  ;;  %v26_v3 = vld [vmem:[%s257_s1 + $0x8] sm:$0xff] }
   0x2   :  { %49 = vmatpush.msra.mxu0 %v28_v0  ;;  %v65_v2 = vld [vmem:[%s259_s3 + $0x38] sm:$0xff]  ;;  %v64_v4 = vld [vmem:[%s259_s3 + $0x30] sm:$0xff]  ;;  %v63_v5 = vld [vmem:[%s259_s3 + $0x28] sm:$0xff] }
   0x3   :  { %82 = vmatpush.msra.mxu1 %v65_v2  ;;  %v25_v6 = vld [vmem:[%s257_s1] sm:$0xff] }
   0x4   :  { %50 = vmatpush.msra.mxu0 %v27_v1 }
   0x5   :  { %83 = vmatpush.msra.mxu1 %v64_v4 }
   0x6   :  { %11 = vsyncpa [#allocation3], 0  ;;  %51 = vmatpush.msra.mxu0 %v26_v3  ;;  %v24_v7 = vld [vmem:[%s256_s0] sm:$0xff]  ;;  %vm33_vm0 = vcmask 261120   ;;  %v61_v9 = vld [vmem:[%s259_s3 + $0x18] sm:$0xff]  ;;  %vm70_vm1 = vcmask 523264  }
   0x7   :  { %v62_v8 = vld [vmem:[%s259_s3 + $0x20] sm:$0xff]  ;;  %84 = vmatpush.msra.mxu1 %v63_v5  ;;  %v60_v10 = vld [vmem:[%s259_s3 + $0x10] sm:$0xff]  ;;  %v59_v11 = vld [vmem:[%s259_s3 + $0x8] sm:$0xff]  ;;  %s166_s25 = smov 16   ;;  %vm108_vm2 = vcmask 130048   ;;  %s167_s27 = smov [#allocation2]  }
   0x8   :  { %52 = vmatpush.msra.mxu0 %v25_v6  ;;  %v58_v12 = vld [vmem:[%s259_s3] sm:$0xff]  ;;  %s165_s3 = smov 112   ;;  %s121_s30 = sshll.u32 %s262_s6, 4  ;;  %vm111_vm3 = vcmask 392192   ;;  %s122_s30 = int_to_ptr.hbm [resolvable:$true] %s121_s30 }
   0x9   :  { %130 = vmatmul.msk.f32.vlgmr.msra.gmra.mxu0 %vm33_vm0, %v24_v7  ;;  %85 = vmatpush.msra.mxu1 %v62_v8  ;;  %v135_v13 = vld [vmem:[%s258_s2] ss:$0 sm:$0xff] }
   0xa   :  { %v136_v17 = vld [vmem:[%s260_s4] ss:$0 sm:$0xff]  ;;  %s119_s4 = sshll.u32 %s167_s27, 4  ;;  %s120_s4 = int_to_ptr.vmem [resolvable:$true] %s119_s4 }
   0xb   :  { %86 = vmatpush.msra.mxu1 %v61_v9  ;;  %v94_v23 = vld [vmem:[%s261_s5] sm:$0xff] }
   0xd   :  { %87 = vmatpush.msra.mxu1 %v60_v10 }
   0xf   :  { %88 = vmatpush.msra.mxu1 %v59_v11 }
  0x11   :  { %89 = vmatpush.msra.mxu1 %v58_v12 }
  0x86   :  { %v54_v14 = vpop.f32.mrf.mxu0 }
  0x87   :  { %v55_v15 = vadd.f32 %v135_v13, %v54_v14 }
  0x89   :  { %v57_v16 = vmax.f32 %v55_v15, 0.0 }
  0x8b   :  { %131 = vmatmul.msk.f32.vlgmr.msra.gmra.mxu1 %vm70_vm1, %v57_v16 }
 0x108   :  { %v91_v18 = vpop.f32.mrf.mxu1 }
 0x109   :  { %v92_v19 = vadd.f32 %v136_v17, %v91_v18 }
 0x10b   :  { %v95_v20 = vmul.f32 0.5, %v92_v19 }
 0x10d   :  { %v96_v21 = vmul.f32 1.442695, %v95_v20 }
 0x10f   :  { %137 = vpow2.f32 %v96_v21 }
 0x115   :  { %v138_v22 = vpop.eup %137 }
 0x116   :  { %99 = vrot.lane.b32.xlu0 %v138_v22, %s165_s3 }
 0x11e   :  { %105 = vrot.lane.b32.xlu0 %v92_v19, %s166_s25 }
 0x188   :  { %v100_v24 = vpop.permute.xlu0 %99 }
 0x189   :  { %v102_v25 = vmul.f32 %v100_v24, %v94_v23 }
 0x18b   :  { %v103_v26 = vadd.f32 %v102_v25, %v92_v19 }
 0x190   :  { %v106_v27 = vpop.permute.xlu0 %105 }
 0x191   :  { %v109_v28 = vsel %vm108_vm2, %v103_v26, %v106_v27 }
 0x192   :  { %v110_v29 = vsel %vm33_vm0, %v109_v28, %v106_v27 }
 0x193   :  { %v112_v30 = vsel %vm111_vm3, %v110_v29, 0.0 }
 0x194   :  { %113 = vst [vmem:[#allocation2] sm:$0xff] %v112_v30 }
 0x195   :  { %124 = dma.vmem_to_hbm [thread:$0]  %s120_s4, 128, %s122_s30, [#allocation3]  }
 0x196   :  { %163 = dma.done.wait [#allocation3], 128  }
 0x197   :  { %164 = vsyncadd [#allocation3], 4294967168 }
 0x198   :  { %129 = vsyncpa [#allocation3], 1 }

</bundles_post_ra>
